<compile_context>
chip_gen: v5e
topology: v5e:2x2
jax: 0.10.0
libtpu: 0.0.40
codegen_flags: <defaults>
</compile_context>

<pallas_src>
import functools

import jax
import jax.numpy as jnp
from jax import lax
from jax.experimental import pallas as pl
from jax.experimental.pallas import tpu as pltpu


# ----------------------------- Pallas kernel -------------------------------

def _patch_embed_kernel(cols_ref, w_ref, seg_ref, params_ref, o_ref,
                        *, eps: float, inv_c2: float):
    # cols_ref  : (TM4, PACK*Kp)      bf16 packed im2col rows
    # w_ref     : (PACK*Kp, PACK*C2)  bf16 block-diagonal projection weight
    # seg_ref   : (PACK*C2, PACK*C2)  bf16 0/1 segment-sum matrix
    # params_ref: (3, PACK*C2)        f32 rows = [bias; gamma; beta]
    # o_ref     : (TM4, PACK*C2)      out_dtype
    # Conv-as-matmul on the MXU: bf16 inputs, f32 accumulation.
    y = jnp.dot(cols_ref[...], w_ref[...], preferred_element_type=jnp.float32)
    y = y + params_ref[0:1, :]                       # conv bias

    # LayerNorm over each C2-lane segment (one logical row per segment).
    # Statistics matmuls on the bf16 MXU path, f32 accumulation.
    seg = seg_ref[...]
    mean = jnp.dot(y.astype(seg.dtype), seg,
                   preferred_element_type=jnp.float32) * inv_c2
    centered = y - mean
    sq = centered * centered
    var = jnp.dot(sq.astype(seg.dtype), seg,
                  preferred_element_type=jnp.float32) * inv_c2
    y_norm = centered * lax.rsqrt(var + eps)
    o_ref[...] = (y_norm * params_ref[1:2, :] + params_ref[2:3, :]).astype(o_ref.dtype)


# ------------------------------ host helpers --------------------------------

def _im2col_nchw(x, patch_size, stride, pad, h_out, w_out):
    """Extract conv patches. Returns (B*h_out*w_out, c1*ps*ps) with K ordered
    as (c1, kh, kw) — matching PyTorch's Conv2d weight.reshape(c2, -1)."""
    b, c1, _, _ = x.shape
    xp = jnp.pad(x, ((0, 0), (0, 0), (pad, pad), (pad, pad)))
    taps = []
    for i in range(patch_size):
        for j in range(patch_size):
            taps.append(
                xp[:, :, i:i + stride * h_out:stride, j:j + stride * w_out:stride]
            )  # (B, c1, h_out, w_out)
    cols = jnp.stack(taps, axis=2)                     # (B, c1, ps*ps, h_out, w_out)
    cols = cols.reshape(b, c1 * patch_size * patch_size, h_out * w_out)
    cols = cols.transpose(0, 2, 1)                     # (B, N, K)
    return cols.reshape(b * h_out * w_out, c1 * patch_size * patch_size)


def patch_embed_pack_params(conv_w, conv_b, ln_gamma, ln_beta,
                            compute_dtype=jnp.bfloat16):
    """Pre-pack the projection weight and LN params into kernel layouts.
    Hoisted out of the per-call path: cache the result with the module params."""
    c2, c1, ph, pw = conv_w.shape
    assert ph == pw, "square patches expected"
    k = c1 * ph * pw

    if c2 <= 128 and 128 % c2 == 0:
        # Lane-dense packing: PACK logical rows share one 128-lane output row.
        pack = 128 // c2
        kp = pl.cdiv(k, c2) * c2          # pack * kp is a multiple of 128
    else:
        # Fallback: no packing (masked partial stores — correct but slower).
        pack = 1
        kp = pl.cdiv(k, 128) * 128
    cp = pack * c2
    pk = pack * kp

    w2d = jnp.pad(conv_w.reshape(c2, k).T.astype(jnp.float32),
                  ((0, kp - k), (0, 0)))                               # (kp, c2)
    # Block-diagonal weight: kron(I_pack, W) -> (pack*kp, pack*c2).
    wp = jnp.kron(jnp.eye(pack, dtype=jnp.float32), w2d).astype(compute_dtype)
    # 0/1 segment-sum matrix (exact in bf16) for per-segment LN statistics.
    seg = jnp.kron(jnp.eye(pack, dtype=jnp.float32),
                   jnp.ones((c2, c2), jnp.float32)).astype(compute_dtype)
    # bias / gamma / beta packed into one resident array (each tiled PACK x).
    params = jnp.stack([
        jnp.tile(conv_b.astype(jnp.float32), pack),
        jnp.tile(ln_gamma.astype(jnp.float32), pack),
        jnp.tile(ln_beta.astype(jnp.float32), pack),
    ], axis=0)                                                         # (3, cp)

    return {"wp": wp, "seg": seg, "params": params,
            "pack": pack, "kp": kp, "cp": cp, "pk": pk,
            "c1": c1, "c2": c2, "k": k, "patch_size": ph,
            "compute_dtype": compute_dtype}


def patch_embed_forward(x, packed, stride=4, eps=1e-5,
                        rows_per_step=16384, out_dtype=jnp.bfloat16):
    """x: (B, c1, H, W) NCHW.  packed: result of patch_embed_pack_params.
    Returns (y, h, w) with y: (B, h*w, c2) in out_dtype."""
    b, c1, h_in, w_in = x.shape
    assert c1 == packed["c1"]
    c2, k, kp = packed["c2"], packed["k"], packed["kp"]
    pack, cp, pk = packed["pack"], packed["cp"], packed["pk"]
    patch_size = packed["patch_size"]
    compute_dtype = packed["compute_dtype"]

    pad = patch_size // 2
    h_out = (h_in + 2 * pad - patch_size) // stride + 1
    w_out = (w_in + 2 * pad - patch_size) // stride + 1
    n = h_out * w_out
    m = b * n

    # ---- row tiling (packed rows of `pack` logical rows each) -------------
    m4 = pl.cdiv(m, pack)
    tile_m4 = max(8, (rows_per_step // pack) // 8 * 8)
    if m4 > 8:  # keep >= 2 grid steps so both v7x TensorCores get work
        tile_m4 = min(tile_m4, max(8, pl.cdiv(pl.cdiv(m4, 2), 8) * 8))
    tile_m4 = max(8, min(tile_m4, pl.cdiv(m4, 8) * 8))
    m4_pad = pl.cdiv(m4, tile_m4) * tile_m4
    m_pad = m4_pad * pack

    # ---- host-side im2col in bf16 ------------------------------------------
    # TODO(synk): fuse patch extraction into the kernel (DMA strided rows of x
    #             per grid step) to remove this materialized HBM copy.
    cols = _im2col_nchw(x.astype(compute_dtype),
                        patch_size, stride, pad, h_out, w_out)         # (M, K)
    cols = jnp.pad(cols, ((0, m_pad - m), (0, kp - k)))                # (Mp, kp)
    cols_packed = cols.reshape(m4_pad, pk)                             # (M4p, pack*kp)

    out = pl.pallas_call(
        functools.partial(_patch_embed_kernel, eps=eps, inv_c2=1.0 / c2),
        out_shape=jax.ShapeDtypeStruct((m4_pad, cp), out_dtype),
        grid_spec=pltpu.PrefetchScalarGridSpec(
            num_scalar_prefetch=0,
            grid=(m4_pad // tile_m4,),
            in_specs=[
                pl.BlockSpec((tile_m4, pk), lambda i: (i, 0)),   # packed im2col rows
                pl.BlockSpec((pk, cp), lambda i: (0, 0)),        # weight (resident)
                pl.BlockSpec((cp, cp), lambda i: (0, 0)),        # segment-sum matrix
                pl.BlockSpec((3, cp), lambda i: (0, 0)),         # bias/gamma/beta
            ],
            out_specs=pl.BlockSpec((tile_m4, cp), lambda i: (i, 0)),
        ),
        compiler_params=pltpu.CompilerParams(
            dimension_semantics=("parallel",),
            vmem_limit_bytes=32 * 1024 * 1024,
        ),
    )(cols_packed, packed["wp"], packed["seg"], packed["params"])

    y = out.reshape(m_pad, c2)[:m]                                     # drop padding
    return y.reshape(b, n, c2), h_out, w_out


# ------------------------------ reference -----------------------------------

def patch_embed_reference(x, conv_w, conv_b, ln_gamma, ln_beta,
                          patch_size=7, stride=4, eps=1e-5):
    pad = patch_size // 2
    y = lax.conv_general_dilated(
        x.astype(jnp.float32), conv_w.astype(jnp.float32),
        window_strides=(stride, stride),
        padding=((pad, pad), (pad, pad)),
        dimension_numbers=("NCHW", "OIHW", "NCHW"),
    ) + conv_b.reshape(1, -1, 1, 1)
    b, c2, h, w = y.shape
    y = y.reshape(b, c2, h * w).transpose(0, 2, 1)            # (B, N, C2)
    mean = jnp.mean(y, axis=-1, keepdims=True)
    var = jnp.mean((y - mean) ** 2, axis=-1, keepdims=True)
    y = (y - mean) / jnp.sqrt(var + eps) * ln_gamma + ln_beta
    return y, h, w


# -------------------------------- main ---------------------------------------

if __name__ == "__main__":
    # Module hyper-params (small synthetic instance).
    C1, C2 = 4, 32
    PATCH, STRIDE = 7, 4
    B, H, W = 2, 16, 16

    key = jax.random.PRNGKey(0)
    k_w, k_b, k_x = jax.random.split(key, 3)

    # Deterministic parameter init (shapes from nn.Conv2d / nn.LayerNorm).
    fan_in = C1 * PATCH * PATCH
    bound = 1.0 / (fan_in ** 0.5)
    conv_w = jax.random.uniform(k_w, (C2, C1, PATCH, PATCH),
                                minval=-bound, maxval=bound, dtype=jnp.float32)
    conv_b = jax.random.uniform(k_b, (C2,), minval=-bound, maxval=bound,
                                dtype=jnp.float32)
    ln_gamma = jnp.ones((C2,), jnp.float32)
    ln_beta = jnp.zeros((C2,), jnp.float32)

    x = jax.random.normal(k_x, (B, C1, H, W), dtype=jnp.float32)

    # Pack the module parameters once (cached with the module in real use).
    packed = patch_embed_pack_params(conv_w, conv_b, ln_gamma, ln_beta)

    y, h, w = patch_embed_forward(x, packed, stride=STRIDE)
    y = jax.block_until_ready(y)

    y_ref, h_ref, w_ref = patch_embed_reference(
        x, conv_w, conv_b, ln_gamma, ln_beta, patch_size=PATCH, stride=STRIDE)

    assert (h, w) == (h_ref, w_ref), (h, w, h_ref, w_ref)
    assert y.shape == (B, h * w, C2), y.shape
    # bf16 projection inputs / bf16 LN statistics / bf16 output -> loose tol.
    y32 = y.astype(jnp.float32)
    assert jnp.allclose(y32, y_ref, atol=5e-2, rtol=5e-2), float(
        jnp.max(jnp.abs(y32 - y_ref)))

    print("KERNEL_OK")
</pallas_src>

<mosaic_0001>
module attributes {stable_mosaic.version = 11 : i64} {
  func.func @_patch_embed_kernel(%arg0: i32, %arg1: memref<8x896xbf16, #tpu.memory_space<vmem>>, %arg2: memref<896x128xbf16, #tpu.memory_space<vmem>>, %arg3: memref<128x128xbf16, #tpu.memory_space<vmem>>, %arg4: memref<3x128xf32, #tpu.memory_space<vmem>>, %arg5: memref<8x128xbf16, #tpu.memory_space<vmem>>) attributes {dimension_semantics = [#tpu.dimension_semantics<parallel>], iteration_bounds = array<i64: 1>, scalar_prefetch = 0 : i64, scratch_operands = 0 : i64, tpu.core_type = #tpu.core_type<tc>, window_params = [{transform_indices = @transform_0, window_bounds = array<i64: 8, 896>}, {pipeline_mode = #tpu.pipeline_mode<synchronous>, transform_indices = @transform_1, window_bounds = array<i64: 896, 128>}, {pipeline_mode = #tpu.pipeline_mode<synchronous>, transform_indices = @transform_2, window_bounds = array<i64: 128, 128>}, {pipeline_mode = #tpu.pipeline_mode<synchronous>, transform_indices = @transform_3, window_bounds = array<i64: 3, 128>}, {transform_indices = @transform_4, window_bounds = array<i64: 8, 128>}]} {
    %c0 = arith.constant 0 : index
    %c0_0 = arith.constant 0 : index
    %0 = vector.load %arg1[%c0, %c0_0] : memref<8x896xbf16, #tpu.memory_space<vmem>>, vector<8x896xbf16>
    %c0_1 = arith.constant 0 : index
    %c0_2 = arith.constant 0 : index
    %1 = vector.load %arg2[%c0_1, %c0_2] : memref<896x128xbf16, #tpu.memory_space<vmem>>, vector<896x128xbf16>
    %cst = arith.constant dense<0.000000e+00> : vector<8x128xf32>
    %2 = tpu.matmul %0, %1, %cst {dimension_numbers = #tpu.dot_dimension_numbers<[1], [0], [0], [1], [0, 0, 1, 1], [], []>} : vector<8x896xbf16>, vector<896x128xbf16>, vector<8x128xf32> -> vector<8x128xf32>
    %c0_3 = arith.constant 0 : index
    %c0_4 = arith.constant 0 : index
    %3 = vector.load %arg4[%c0_3, %c0_4] : memref<3x128xf32, #tpu.memory_space<vmem>>, vector<1x128xf32>
    %4 = vector.broadcast %3 : vector<1x128xf32> to vector<8x128xf32>
    %5 = arith.addf %2, %4 : vector<8x128xf32>
    %c0_5 = arith.constant 0 : index
    %c0_6 = arith.constant 0 : index
    %6 = vector.load %arg3[%c0_5, %c0_6] : memref<128x128xbf16, #tpu.memory_space<vmem>>, vector<128x128xbf16>
    %7 = arith.truncf %5 : vector<8x128xf32> to vector<8x128xbf16>
    %cst_7 = arith.constant dense<0.000000e+00> : vector<8x128xf32>
    %8 = tpu.matmul %7, %6, %cst_7 {dimension_numbers = #tpu.dot_dimension_numbers<[1], [0], [0], [1], [0, 0, 1, 1], [], []>} : vector<8x128xbf16>, vector<128x128xbf16>, vector<8x128xf32> -> vector<8x128xf32>
    %cst_8 = arith.constant 3.125000e-02 : f32
    %9 = vector.broadcast %cst_8 : f32 to vector<8x128xf32>
    %10 = arith.mulf %8, %9 : vector<8x128xf32>
    %11 = arith.subf %5, %10 : vector<8x128xf32>
    %12 = arith.mulf %11, %11 : vector<8x128xf32>
    %13 = arith.truncf %12 : vector<8x128xf32> to vector<8x128xbf16>
    %cst_9 = arith.constant dense<0.000000e+00> : vector<8x128xf32>
    %14 = tpu.matmul %13, %6, %cst_9 {dimension_numbers = #tpu.dot_dimension_numbers<[1], [0], [0], [1], [0, 0, 1, 1], [], []>} : vector<8x128xbf16>, vector<128x128xbf16>, vector<8x128xf32> -> vector<8x128xf32>
    %cst_10 = arith.constant 3.125000e-02 : f32
    %15 = vector.broadcast %cst_10 : f32 to vector<8x128xf32>
    %16 = arith.mulf %14, %15 : vector<8x128xf32>
    %cst_11 = arith.constant 9.99999974E-6 : f32
    %17 = vector.broadcast %cst_11 : f32 to vector<8x128xf32>
    %18 = arith.addf %16, %17 : vector<8x128xf32>
    %19 = math.rsqrt %18 : vector<8x128xf32>
    %20 = arith.mulf %11, %19 : vector<8x128xf32>
    %c1 = arith.constant 1 : index
    %c0_12 = arith.constant 0 : index
    %21 = vector.load %arg4[%c1, %c0_12] : memref<3x128xf32, #tpu.memory_space<vmem>>, vector<1x128xf32>
    %22 = vector.broadcast %21 : vector<1x128xf32> to vector<8x128xf32>
    %23 = arith.mulf %20, %22 : vector<8x128xf32>
    %c2 = arith.constant 2 : index
    %c0_13 = arith.constant 0 : index
    %24 = vector.load %arg4[%c2, %c0_13] : memref<3x128xf32, #tpu.memory_space<vmem>>, vector<1x128xf32>
    %25 = vector.broadcast %24 : vector<1x128xf32> to vector<8x128xf32>
    %26 = arith.addf %23, %25 : vector<8x128xf32>
    %27 = arith.truncf %26 : vector<8x128xf32> to vector<8x128xbf16>
    %c0_14 = arith.constant 0 : index
    %c0_15 = arith.constant 0 : index
    %28 = vector.load %arg5[%c0_14, %c0_15] : memref<8x128xbf16, #tpu.memory_space<vmem>>, vector<8x128xbf16>
    tpu.vector_store %arg5[%c0_14, %c0_15], %27 {strides = array<i32>} : memref<8x128xbf16, #tpu.memory_space<vmem>>, vector<8x128xbf16>,
    return
  }
  func.func @transform_0(%arg0: i32) -> (i32, i32) {
    %c0_i32 = arith.constant 0 : i32
    %c0_i32_0 = arith.constant 0 : i32
    return %arg0, %c0_i32 : i32, i32
  }
  func.func @transform_1(%arg0: i32) -> (i32, i32) {
    %c0_i32 = arith.constant 0 : i32
    %c0_i32_0 = arith.constant 0 : i32
    %c0_i32_1 = arith.constant 0 : i32
    return %c0_i32, %c0_i32_0 : i32, i32
  }
  func.func @transform_2(%arg0: i32) -> (i32, i32) {
    %c0_i32 = arith.constant 0 : i32
    %c0_i32_0 = arith.constant 0 : i32
    %c0_i32_1 = arith.constant 0 : i32
    return %c0_i32, %c0_i32_0 : i32, i32
  }
  func.func @transform_3(%arg0: i32) -> (i32, i32) {
    %c0_i32 = arith.constant 0 : i32
    %c0_i32_0 = arith.constant 0 : i32
    %c0_i32_1 = arith.constant 0 : i32
    return %c0_i32, %c0_i32_0 : i32, i32
  }
  func.func @transform_4(%arg0: i32) -> (i32, i32) {
    %c0_i32 = arith.constant 0 : i32
    %c0_i32_0 = arith.constant 0 : i32
    return %arg0, %c0_i32 : i32, i32
  }
}

</mosaic_0001>

<bundles_post_ra>
// kernel: tpu_custom_call.1
= control target key start
LH: loop header
LB: loop body
LE: loop exit
PB: predicated region body
PF: predicated region fallthrough
CT: control target
= control target key end

     0   :  { %9 = vsyncpa [#allocation3], 0  ;;  %s1289_s0 = inlined_call_operand.hbm [shape: bf16[8,896], index: 0, kind: input, shape index: {}]   ;;  %s1290_s1 = inlined_call_operand.hbm [shape: bf16[896,128], index: 1, kind: input, shape index: {}]   ;;  %s1291_s2 = inlined_call_operand.hbm [shape: bf16[128,128], index: 2, kind: input, shape index: {}]   ;;  %s1292_s3 = inlined_call_operand.hbm [shape: f32[3,128], index: 3, kind: input, shape index: {}]   ;;  %s1293_s4 = inlined_call_operand.hbm [shape: bf16[8,128], index: 4, kind: output, shape index: {}]  }
   0x1   :  { %10 = vsyncpa [#allocation6], 0 }
   0x2   :  { %11 = vsyncpa [#allocation9], 0  ;;  %s28_s17 = sshll.u32 %s1290_s1, 4  ;;  %s29_s17 = int_to_ptr.hbm [resolvable:$true] %s28_s17 }
   0x3   :  { %12 = vsyncpa [#allocation4], 0  ;;  %s1242_s18 = smov [#allocation5]   ;;  %s18_s22 = sshll.u32 %s1289_s0, 4  ;;  %s19_s22 = int_to_ptr.hbm [resolvable:$true] %s18_s22 }
   0x4   :  { %s30_s19 = sshll.u32 %s1242_s18, 4  ;;  %s1243_s23 = smov 64   ;;  %s31_s19 = int_to_ptr.vmem [resolvable:$true] %s30_s19 }
   0x5   :  { %s1244_s24 = smov 4   ;;  %s1245_s25 = smov [#allocation2]  }
   0x6   :  { %36 = dma.hbm_to_vmem [thread:$0]  %s29_s17, 7168, %s31_s19, [#allocation6], %s1243_s23, %s1243_s23, %s1244_s24  }
   0x7   :  { %s20_s26 = sshll.u32 %s1245_s25, 4  ;;  %s41_s29 = sshll.u32 %s1291_s2, 4  ;;  %s21_s26 = int_to_ptr.vmem [resolvable:$true] %s20_s26  ;;  %s42_s29 = int_to_ptr.hbm [resolvable:$true] %s41_s29 }
   0x8   :  { %23 = dma.hbm_to_vmem [thread:$0]  %s19_s22, 448, %s21_s26, [#allocation3]  }
   0x9   :  { %s55_s5 = sshll.u32 %s1292_s3, 4  ;;  %s1246_s6 = smov [#allocation7]   ;;  %s56_s5 = int_to_ptr.hbm [resolvable:$true] %s55_s5 }
   0xa   :  { %s43_s7 = sshll.u32 %s1246_s6, 4  ;;  %s1247_s0 = smov [#allocation8]   ;;  %s44_s7 = int_to_ptr.vmem [resolvable:$true] %s43_s7 }
   0xb   :  { %49 = dma.hbm_to_vmem [thread:$0]  %s42_s29, 1024, %s44_s7, [#allocation6], %s1243_s23, %s1243_s23, %s1244_s24  }
   0xc   :  { %s57_s8 = sshll.u32 %s1247_s0, 4  ;;  %s58_s8 = int_to_ptr.vmem [resolvable:$true] %s57_s8 }
   0xd   :  { %60 = dma.hbm_to_vmem [thread:$0]  %s56_s5, 64, %s58_s8, [#allocation9]  }
   0xe   :  { %1234 = dma.done.wait [#allocation3], 448  }
   0xf   :  { %1235 = vsyncadd [#allocation3], 4294966848 }
  0x10   :  { %1236 = dma.done.wait [#allocation6], 8192  }
  0x11   :  { %1237 = vsyncadd [#allocation6], 4294959104 }
  0x12   :  { %1238 = dma.done.wait [#allocation9], 64  }
  0x13   :  { %1239 = vsyncadd [#allocation9], 4294967232  ;;  %v1045_v0 = vld [vmem:[#allocation5 + $0x38] sm:$0xff]  ;;  %v1044_v3 = vld [vmem:[#allocation5 + $0x30] sm:$0xff]  ;;  %s1248_s2 = smov [#allocation10]   ;;  %s770_s11 = sshll.u32 %s1293_s4, 4  ;;  %s771_s11 = int_to_ptr.hbm [resolvable:$true] %s770_s11 }
  0x14   :  { %v1053_v1 = vld [vmem:[#allocation5 + $0x78] sm:$0xff]  ;;  %556 = vmatpush.bf16.msra.mxu0 %v1045_v0  ;;  %v1052_v4 = vld [vmem:[#allocation5 + $0x70] sm:$0xff]  ;;  %v1043_v7 = vld [vmem:[#allocation5 + $0x28] sm:$0xff]  ;;  %s768_s3 = sshll.u32 %s1248_s2, 4  ;;  %s769_s3 = int_to_ptr.vmem [resolvable:$true] %s768_s3 }
  0x15   :  { %v1061_v2 = vld [vmem:[#allocation5 + $0xb8] sm:$0xff]  ;;  %569 = vmatpush.bf16.msra.mxu1 %v1053_v1  ;;  %v1060_v5 = vld [vmem:[#allocation5 + $0xb0] sm:$0xff]  ;;  %v1051_v8 = vld [vmem:[#allocation5 + $0x68] sm:$0xff] }
  0x16   :  { %582 = vmatpush.bf16.msra.mxu2 %v1061_v2  ;;  %v1069_v6 = vld [vmem:[#allocation5 + $0xf8] sm:$0xff]  ;;  %v1059_v9 = vld [vmem:[#allocation5 + $0xa8] sm:$0xff]  ;;  %v1068_v10 = vld [vmem:[#allocation5 + $0xf0] sm:$0xff] }
  0x17   :  { %595 = vmatpush.bf16.msra.mxu3 %v1069_v6  ;;  %v1042_v11 = vld [vmem:[#allocation5 + $0x20] sm:$0xff]  ;;  %v1067_v14 = vld [vmem:[#allocation5 + $0xe8] sm:$0xff]  ;;  %v1041_v15 = vld [vmem:[#allocation5 + $0x18] sm:$0xff] }
  0x18   :  { %557 = vmatpush.bf16.msra.mxu0 %v1044_v3  ;;  %v1050_v12 = vld [vmem:[#allocation5 + $0x60] sm:$0xff]  ;;  %v1049_v16 = vld [vmem:[#allocation5 + $0x58] sm:$0xff]  ;;  %v1040_v19 = vld [vmem:[#allocation5 + $0x10] sm:$0xff] }
  0x19   :  { %570 = vmatpush.bf16.msra.mxu1 %v1052_v4  ;;  %v1058_v13 = vld [vmem:[#allocation5 + $0xa0] sm:$0xff]  ;;  %v1057_v17 = vld [vmem:[#allocation5 + $0x98] sm:$0xff]  ;;  %v1048_v20 = vld [vmem:[#allocation5 + $0x50] sm:$0xff] }
  0x1a   :  { %583 = vmatpush.bf16.msra.mxu2 %v1060_v5  ;;  %v1066_v18 = vld [vmem:[#allocation5 + $0xe0] sm:$0xff]  ;;  %v1056_v21 = vld [vmem:[#allocation5 + $0x90] sm:$0xff]  ;;  %v1065_v22 = vld [vmem:[#allocation5 + $0xd8] sm:$0xff] }
  0x1b   :  { %596 = vmatpush.bf16.msra.mxu3 %v1068_v10  ;;  %v1039_v23 = vld [vmem:[#allocation5 + $0x8] sm:$0xff]  ;;  %v1064_v27 = vld [vmem:[#allocation5 + $0xd0] sm:$0xff]  ;;  %v1038_v30 = vld [vmem:[#allocation5] sm:$0xff] }
  0x1c   :  { %558 = vmatpush.bf16.msra.mxu0 %v1043_v7  ;;  %v1047_v24 = vld [vmem:[#allocation5 + $0x48] sm:$0xff]  ;;  %v1046_v31 = vld [vmem:[#allocation5 + $0x40] sm:$0xff]  ;;  %v1077_v35 = vld [vmem:[#allocation5 + $0x138] sm:$0xff] }
  0x1d   :  { %571 = vmatpush.bf16.msra.mxu1 %v1051_v8  ;;  %v77_v25 = vld [vmem:[#allocation2] sm:$0xff]  ;;  %v78_v28 = vld [vmem:[#allocation2 + $0x8] sm:$0xff]  ;;  %v1085_v36 = vld [vmem:[#allocation5 + $0x178] sm:$0xff] }
  0x1e   :  { %584 = vmatpush.bf16.msra.mxu2 %v1059_v9  ;;  %v1055_v26 = vld [vmem:[#allocation5 + $0x88] sm:$0xff]  ;;  %v199_v29 = vunpack.c.l.b16 %v77_v25  ;;  %v201_v32 = vunpack.c.l.b16 %v78_v28  ;;  %v200_v33 = vunpack.c.h.b16 %v77_v25  ;;  %v1054_v34 = vld [vmem:[#allocation5 + $0x80] sm:$0xff]  ;;  %v1093_v37 = vld [vmem:[#allocation5 + $0x1b8] sm:$0xff]  ;;  %v202_v46 = vunpack.c.h.b16 %v78_v28 }
  0x1f   :  { %597 = vmatpush.bf16.msra.mxu3 %v1067_v14  ;;  %v1063_v39 = vld [vmem:[#allocation5 + $0xc8] sm:$0xff]  ;;  %v1076_v42 = vld [vmem:[#allocation5 + $0x130] sm:$0xff]  ;;  %v1062_v45 = vld [vmem:[#allocation5 + $0xc0] sm:$0xff] }
  0x20   :  { %559 = vmatpush.bf16.msra.mxu0 %v1042_v11  ;;  %v206_v38 = vpack.c.b16 %v199_v29, %v199_v29  ;;  %v208_v40 = vpack.c.b16 %v201_v32, %v201_v32  ;;  %v207_v41 = vpack.c.b16 %v200_v33, %v200_v33  ;;  %v1084_v43 = vld [vmem:[#allocation5 + $0x170] sm:$0xff]  ;;  %v1075_v47 = vld [vmem:[#allocation5 + $0x128] sm:$0xff]  ;;  %v209_v50 = vpack.c.b16 %v202_v46, %v202_v46  ;;  %v1074_v51 = vld [vmem:[#allocation5 + $0x120] sm:$0xff] }
  0x21   :  { %572 = vmatpush.bf16.msra.mxu1 %v1050_v12  ;;  %v1092_v44 = vld [vmem:[#allocation5 + $0x1b0] sm:$0xff]  ;;  %v1083_v48 = vld [vmem:[#allocation5 + $0x168] sm:$0xff]  ;;  %v1082_v52 = vld [vmem:[#allocation5 + $0x160] sm:$0xff] }
  0x22   :  { %585 = vmatpush.bf16.msra.mxu2 %v1058_v13  ;;  %v1091_v49 = vld [vmem:[#allocation5 + $0x1a8] sm:$0xff]  ;;  %v1090_v53 = vld [vmem:[#allocation5 + $0x1a0] sm:$0xff]  ;;  %v1073_v54 = vld [vmem:[#allocation5 + $0x118] sm:$0xff] }
  0x23   :  { %598 = vmatpush.bf16.msra.mxu3 %v1066_v18  ;;  %v1081_v55 = vld [vmem:[#allocation5 + $0x158] sm:$0xff]  ;;  %v1072_v57 = vld [vmem:[#allocation5 + $0x110] sm:$0xff]  ;;  %v1071_v60 = vld [vmem:[#allocation5 + $0x108] sm:$0xff] }
  0x24   :  { %560 = vmatpush.bf16.msra.mxu0 %v1041_v15  ;;  %v1089_v56 = vld [vmem:[#allocation5 + $0x198] sm:$0xff]  ;;  %v1080_v58 = vld [vmem:[#allocation5 + $0x150] sm:$0xff]  ;;  %v1079_v62 = vld [vmem:[#allocation5 + $0x148] sm:$0xff] }
  0x25   :  { %573 = vmatpush.bf16.msra.mxu1 %v1049_v16  ;;  %v1088_v59 = vld [vmem:[#allocation5 + $0x190] sm:$0xff]  ;;  %v1087_v63 = vld [vmem:[#allocation5 + $0x188] sm:$0xff]  ;;  %v80_v0 = vld [vmem:[#allocation2 + $0x18] sm:$0xf] }
  0x26   :  { %586 = vmatpush.bf16.msra.mxu2 %v1057_v17  ;;  %v79_v61 = vld [vmem:[#allocation2 + $0x10] sm:$0xff]  ;;  %v1070_v2 = vld [vmem:[#allocation5 + $0x100] sm:$0xff]  ;;  %v205_v4 = vunpack.c.l.b16 %v80_v0  ;;  %v1099_v12 = vld [vmem:[#allocation7 + $0x28] sm:$0xff] }
  0x27   :  { %599 = vmatpush.bf16.msra.mxu3 %v1065_v22  ;;  %v203_v1 = vunpack.c.l.b16 %v79_v61  ;;  %v204_v3 = vunpack.c.h.b16 %v79_v61  ;;  %v1078_v5 = vld [vmem:[#allocation5 + $0x140] sm:$0xff]  ;;  %v1101_v10 = vld [vmem:[#allocation7 + $0x38] sm:$0xff]  ;;  %v1100_v11 = vld [vmem:[#allocation7 + $0x30] sm:$0xff] }
  0x28   :  { %561 = vmatpush.bf16.msra.mxu0 %v1040_v19  ;;  %v1086_v6 = vld [vmem:[#allocation5 + $0x180] sm:$0xff]  ;;  %v212_v9 = vpack.c.b16 %v205_v4, %v205_v4  ;;  %v1097_v14 = vld [vmem:[#allocation7 + $0x18] sm:$0xff]  ;;  %v1096_v15 = vld [vmem:[#allocation7 + $0x10] sm:$0xff] }
  0x29   :  { %574 = vmatpush.bf16.msra.mxu1 %v1048_v20  ;;  %v210_v7 = vpack.c.b16 %v203_v1, %v203_v1  ;;  %v211_v8 = vpack.c.b16 %v204_v3, %v204_v3  ;;  %v1098_v13 = vld [vmem:[#allocation7 + $0x20] sm:$0xff]  ;;  %v1095_v17 = vld [vmem:[#allocation7 + $0x8] sm:$0xff] }
  0x2a   :  { %587 = vmatpush.bf16.msra.mxu2 %v1056_v21  ;;  %v1094_v19 = vld [vmem:[#allocation7] sm:$0xff] }
  0x2b   :  { %600 = vmatpush.bf16.msra.mxu3 %v1064_v27 }
  0x2c   :  { %562 = vmatpush.bf16.msra.mxu0 %v1039_v23  ;;  %v1109_v23 = vld [vmem:[#allocation8] ss:$0 sm:$0xff] }
  0x2d   :  { %575 = vmatpush.bf16.msra.mxu1 %v1047_v24 }
  0x2e   :  { %588 = vmatpush.bf16.msra.mxu2 %v1055_v26 }
  0x2f   :  { %601 = vmatpush.bf16.msra.mxu3 %v1063_v39 }
  0x30   :  { %563 = vmatpush.bf16.msra.mxu0 %v1038_v30 }
  0x31   :  { %576 = vmatpush.bf16.msra.mxu1 %v1046_v31 }
  0x32   :  { %589 = vmatpush.bf16.msra.mxu2 %v1054_v34 }
  0x33   :  { %564 = vmatmul.bf16.vlgmr.msra.gmra.mxu0 %v206_v38  ;;  %602 = vmatpush.bf16.msra.mxu3 %v1062_v45 }
  0x34   :  { %608 = vmatpush.bf16.msrb.mxu0 %v1077_v35  ;;  %577 = vmatmul.bf16.vlgmr.msra.gmra.mxu1 %v207_v41 }
  0x35   :  { %621 = vmatpush.bf16.msrb.mxu1 %v1085_v36  ;;  %590 = vmatmul.bf16.vlgmr.msra.gmra.mxu2 %v208_v40 }
  0x36   :  { %634 = vmatpush.bf16.msrb.mxu2 %v1093_v37  ;;  %603 = vmatmul.bf16.vlgmr.msra.gmra.mxu3 %v209_v50 }
  0x37   :  { %712 = vmatpush.bf16.msrb.mxu3 %v1101_v10 }
  0x38   :  { %609 = vmatpush.bf16.msrb.mxu0 %v1076_v42 }
  0x39   :  { %622 = vmatpush.bf16.msrb.mxu1 %v1084_v43 }
  0x3a   :  { %635 = vmatpush.bf16.msrb.mxu2 %v1092_v44 }
  0x3b   :  { %713 = vmatpush.bf16.msrb.mxu3 %v1100_v11 }
  0x3c   :  { %610 = vmatpush.bf16.msrb.mxu0 %v1075_v47 }
  0x3d   :  { %623 = vmatpush.bf16.msrb.mxu1 %v1083_v48 }
  0x3e   :  { %636 = vmatpush.bf16.msrb.mxu2 %v1091_v49 }
  0x3f   :  { %714 = vmatpush.bf16.msrb.mxu3 %v1099_v12 }
  0x40   :  { %611 = vmatpush.bf16.msrb.mxu0 %v1074_v51 }
  0x41   :  { %624 = vmatpush.bf16.msrb.mxu1 %v1082_v52 }
  0x42   :  { %637 = vmatpush.bf16.msrb.mxu2 %v1090_v53 }
  0x43   :  { %715 = vmatpush.bf16.msrb.mxu3 %v1098_v13 }
  0x44   :  { %612 = vmatpush.bf16.msrb.mxu0 %v1073_v54 }
  0x45   :  { %625 = vmatpush.bf16.msrb.mxu1 %v1081_v55 }
  0x46   :  { %638 = vmatpush.bf16.msrb.mxu2 %v1089_v56 }
  0x47   :  { %716 = vmatpush.bf16.msrb.mxu3 %v1097_v14 }
  0x48   :  { %613 = vmatpush.bf16.msrb.mxu0 %v1072_v57  ;;  %v1110_v57 = vld [vmem:[#allocation8 + $0x1] ss:$0 sm:$0xff] }
  0x49   :  { %626 = vmatpush.bf16.msrb.mxu1 %v1080_v58 }
  0x4a   :  { %639 = vmatpush.bf16.msrb.mxu2 %v1088_v59 }
  0x4b   :  { %717 = vmatpush.bf16.msrb.mxu3 %v1096_v15 }
  0x4c   :  { %614 = vmatpush.bf16.msrb.mxu0 %v1071_v60  ;;  %v1111_v60 = vld [vmem:[#allocation8 + $0x2] ss:$0 sm:$0xff] }
  0x4d   :  { %627 = vmatpush.bf16.msrb.mxu1 %v1079_v62 }
  0x4e   :  { %640 = vmatpush.bf16.msrb.mxu2 %v1087_v63 }
  0x4f   :  { %718 = vmatpush.bf16.msrb.mxu3 %v1095_v17 }
  0x50   :  { %615 = vmatpush.bf16.msrb.mxu0 %v1070_v2 }
  0x51   :  { %628 = vmatpush.bf16.msrb.mxu1 %v1078_v5 }
  0x52   :  { %641 = vmatpush.bf16.msrb.mxu2 %v1086_v6 }
  0x53   :  { %616 = vmatmul.bf16.vlgmr.msrb.gmra.mxu0 %v210_v7  ;;  %719 = vmatpush.bf16.msrb.mxu3 %v1094_v19 }
  0x54   :  { %629 = vmatmul.bf16.vlgmr.msrb.gmra.mxu1 %v211_v8  ;;  %729 = vmatpush.bf16.msra.mxu0 %v1101_v10 }
  0x55   :  { %642 = vmatmul.bf16.vlgmr.msrb.gmra.mxu2 %v212_v9 }
  0x58   :  { %730 = vmatpush.bf16.msra.mxu0 %v1100_v11 }
  0x5c   :  { %731 = vmatpush.bf16.msra.mxu0 %v1099_v12 }
  0x60   :  { %732 = vmatpush.bf16.msra.mxu0 %v1098_v13 }
  0x64   :  { %733 = vmatpush.bf16.msra.mxu0 %v1097_v14 }
  0x68   :  { %734 = vmatpush.bf16.msra.mxu0 %v1096_v15 }
  0x6c   :  { %735 = vmatpush.bf16.msra.mxu0 %v1095_v17 }
  0x70   :  { %736 = vmatpush.bf16.msra.mxu0 %v1094_v19 }
  0xb0   :  { %v565_v16 = vpop.f32.mrf.mxu0 }
  0xb1   :  { %v578_v18 = vpop.f32.mrf.mxu1  ;;  %v566_v26 = vadd.f32 %v1109_v23, %v565_v16 }
  0xb3   :  { %v579_v27 = vadd.f32 %v578_v18, %v566_v26 }
  0xb8   :  { %v591_v20 = vpop.f32.mrf.mxu2  ;;  %v567_v21 = vpop.f32.mrf.mxu0 }
  0xb9   :  { %v580_v22 = vpop.f32.mrf.mxu1  ;;  %v604_v24 = vpop.f32.mrf.mxu3  ;;  %v592_v29 = vadd.f32 %v591_v20, %v579_v27 }
  0xbb   :  { %v605_v30 = vadd.f32 %v604_v24, %v592_v29 }
  0xc0   :  { %v593_v25 = vpop.f32.mrf.mxu2 }
  0xc1   :  { %v606_v28 = vpop.f32.mrf.mxu3 }
  0xd0   :  { %v617_v31 = vpop.f32.mrf.mxu0 }
  0xd1   :  { %v630_v32 = vpop.f32.mrf.mxu1  ;;  %v618_v33 = vadd.f32 %v617_v31, %v605_v30 }
  0xd3   :  { %v631_v34 = vadd.f32 %v630_v32, %v618_v33 }
  0xd8   :  { %v643_v35 = vpop.f32.mrf.mxu2  ;;  %v619_v37 = vpop.f32.mrf.mxu0 }
  0xd9   :  { %v644_v36 = vadd.f32 %v643_v35, %v631_v34  ;;  %v632_v38 = vpop.f32.mrf.mxu1 }
  0xdb   :  { %v663_v39 = vpack.c.bf16 %v644_v36, %v644_v36 }
  0xdd   :  { %720 = vmatmul.bf16.vlgmr.msrb.gmra.mxu3 %v663_v39 }
  0xe0   :  { %v645_v40 = vpop.f32.mrf.mxu2 }
 0x160   :  { %v721_v41 = vpop.f32.mrf.mxu3 }
 0x161   :  { %v725_v42 = vmul.f32 0.03125, %v721_v41 }
 0x163   :  { %v726_v43 = vsub.f32 %v644_v36, %v725_v42 }
 0x165   :  { %v727_v44 = vmul.f32 %v726_v43, %v726_v43 }
 0x167   :  { %v728_v45 = vpack.c.bf16 %v727_v44, %v727_v44 }
 0x168   :  { %v723_v46 = vpop.f32.mrf.mxu3 }
 0x169   :  { %737 = vmatmul.bf16.vlgmr.msra.gmra.mxu0 %v728_v45 }
 0x1e6   :  { %v738_v47 = vpop.f32.mrf.mxu0 }
 0x1e7   :  { %v742_v48 = vmul.f32 0.03125, %v738_v47 }
 0x1e9   :  { %v743_v49 = vadd.f32 1e-05, %v742_v48 }
 0x1eb   :  { %1112 = vrsqrt.f32 %v743_v49  ;;  %vm750_vm1 = vweird.f32 %v743_v49 }
 0x1ee   :  { %v740_v50 = vpop.f32.mrf.mxu0 }
 0x1f1   :  { %v1113_v51 = vpop.eup %1112 }
 0x1f2   :  { %v745_v52 = vmul.f32 %v1113_v51, %v743_v49  ;;  %vm751_vm0 = vweird.f32 %v1113_v51 }
 0x1f3   :  { %vm752_vm2 = vmor %vm750_vm1, %vm751_vm0 }
 0x1f4   :  { %v746_v53 = vmul.f32 %v1113_v51, %v745_v52 }
 0x1f6   :  { %v747_v54 = vmul.f32 0.5, %v746_v53 }
 0x1f8   :  { %v748_v55 = vsub.f32 1.5, %v747_v54 }
 0x1fa   :  { %v749_v56 = vmul.f32 %v1113_v51, %v748_v55 }
 0x1fc   :  { %v753_v58 = vsel %vm752_vm2, %v1113_v51, %v749_v56 }
 0x1fd   :  { %v754_v59 = vmul.f32 %v753_v58, %v726_v43 }
 0x1ff   :  { %v757_v61 = vmul.f32 %v1110_v57, %v754_v59 }
 0x201   :  { %v760_v62 = vadd.f32 %v1111_v60, %v757_v61 }
 0x203   :  { %v761_v63 = vpack.c.bf16 %v760_v62, %v760_v62 }
 0x205   :  { %762 = vst [vmem:[#allocation10] sm:$0xf] %v761_v63 }
 0x206   :  { %773 = dma.vmem_to_hbm [thread:$0]  %s769_s3, 64, %s771_s11, [#allocation4]  }
 0x207   :  { %1240 = dma.done.wait [#allocation4], 64  }
 0x208   :  { %1241 = vsyncadd [#allocation4], 4294967232 }
 0x209   :  { %778 = vsyncpa [#allocation3], 1 }
 0x20a   :  { %779 = vsyncpa [#allocation6], 1 }
 0x20b   :  { %780 = vsyncpa [#allocation9], 1 }
 0x20c   :  { %781 = vsyncpa [#allocation4], 1 }

</bundles_post_ra>
